<compile_context>
chip_gen: v5e
topology: v5e:2x2
jax: 0.10.0
libtpu: 0.0.40
codegen_flags: <defaults>
</compile_context>

<pallas_src>
import functools

import jax
import jax.numpy as jnp
from jax import lax
from jax.experimental import pallas as pl
from jax.experimental.pallas import tpu as pltpu

SCALE_GENE = 80.0
LN_EPS = 1e-5


def attention_gene_kernel(x_ref, gamma_ref, beta_ref, wq_ref, wk_ref, wv_ref,
                          wproj_ref, bproj_ref, out_ref, k_scratch, v_scratch,
                          *, num_heads, tq, kv_chunk, compute_dtype, approx_recip):
    qi = pl.program_id(1)
    _, n_tok, dim = x_ref.shape
    hd = dim // num_heads
    n_chunks = n_tok // kv_chunk

    gamma = gamma_ref[...].astype(jnp.float32)          # (1, C)
    beta = beta_ref[...].astype(jnp.float32)            # (1, C)

    def layer_norm(z):                                   # z: (rows, C), f32 math
        mu = jnp.mean(z, axis=-1, keepdims=True)
        zc = z - mu
        var = jnp.mean(zc * zc, axis=-1, keepdims=True)
        return zc * lax.rsqrt(var + LN_EPS) * gamma + beta

    # ---- once per batch element: whole-sequence K / V, chunked over rows ----
    # Bounded transients: only `kv_chunk` rows of LN output / K / V are live.
    @pl.when(qi == 0)
    def _precompute_kv():
        @pl.loop(0, n_chunks)
        def _(c):
            r0 = pl.multiple_of(c * kv_chunk, kv_chunk)
            xn = layer_norm(x_ref[0, pl.ds(r0, kv_chunk), :].astype(jnp.float32))
            xn = xn.astype(compute_dtype)
            k_c = jnp.dot(xn, wk_ref[...],
                          preferred_element_type=jnp.float32).astype(compute_dtype)
            v_c = jnp.dot(xn, wv_ref[...],
                          preferred_element_type=jnp.float32).astype(compute_dtype)
            # Split into the per-head (H, N, hd) scratch layout with static lane
            # slices (amortized once per batch element).
            for h in range(num_heads):
                k_scratch[h, pl.ds(r0, kv_chunk), :] = k_c[:, h * hd:(h + 1) * hd]
                v_scratch[h, pl.ds(r0, kv_chunk), :] = v_c[:, h * hd:(h + 1) * hd]

    # ---- every grid step: one query tile ----
    row0 = pl.multiple_of(qi * tq, tq)
    xq = layer_norm(x_ref[0, pl.ds(row0, tq), :].astype(jnp.float32))
    xq = xq.astype(compute_dtype)                        # (TQ, C)

    def head_body(h, acc):
        # Per-head q projection; softmax scale * 80 is folded into Wq on host.
        q_h = jnp.dot(xq, wq_ref[h],                     # (TQ, hd), f32 acc
                      preferred_element_type=jnp.float32).astype(compute_dtype)
        k_h = k_scratch[h]                               # (N, hd)
        v_h = v_scratch[h]                               # (N, hd)
        logits = jnp.einsum('qd,kd->qk', q_h, k_h,
                            preferred_element_type=jnp.float32)      # (TQ, N)
        logits = logits - jnp.max(logits, axis=-1, keepdims=True)
        p = jnp.exp(logits)
        p = p * pl.reciprocal(jnp.sum(p, axis=-1, keepdims=True), approx=approx_recip)
        ctx_h = jnp.dot(p.astype(compute_dtype), v_h,
                        preferred_element_type=jnp.float32)           # (TQ, hd)
        # Distribute the output projection per head: acc += ctx_h @ Wproj[h].
        return acc + jnp.dot(ctx_h.astype(compute_dtype), wproj_ref[h],
                             preferred_element_type=jnp.float32)      # (TQ, C)

    acc0 = jnp.broadcast_to(bproj_ref[...].astype(jnp.float32), (tq, dim))
    out = lax.fori_loop(0, num_heads, head_body, acc0)
    out_ref[0] = out.astype(out_ref.dtype)


def _pick_q_tile(n_tokens):
    """Largest convenient query tile dividing N (per-head loop bounds VMEM)."""
    if n_tokens <= 256:
        return n_tokens
    for cand in (256, 128, 64, 32, 16, 8):
        if n_tokens % cand == 0:
            return cand
    # TODO(synk): pad ragged N to a multiple of 8 instead of a full-N tile.
    return n_tokens


def _pick_kv_chunk(n_tokens):
    """Row-chunk size for the qi==0 K/V precompute."""
    for cand in (512, 256, 128, 64, 32, 16, 8):
        if n_tokens % cand == 0:
            return cand
    return n_tokens


@functools.lru_cache(maxsize=None)
def _single_buffer_supported():
    """Probe whether this Pallas build accepts pipeline_mode=pl.Buffered(1)."""
    if not hasattr(pl, "Buffered"):
        return False

    def _copy(x_ref, o_ref):
        o_ref[...] = x_ref[...]

    try:
        spec = pl.BlockSpec((8, 128), lambda i: (0, 0), pipeline_mode=pl.Buffered(1))
        out = pl.pallas_call(
            _copy,
            out_shape=jax.ShapeDtypeStruct((8, 128), jnp.float32),
            grid=(1,),
            in_specs=[spec],
            out_specs=pl.BlockSpec((8, 128), lambda i: (0, 0)),
        )(jnp.zeros((8, 128), jnp.float32))
        jax.block_until_ready(out)
        return True
    except Exception:  # noqa: BLE001 — any failure => fall back to default buffering
        return False


def _vmem_capacity_bytes():
    try:
        return int(pltpu.get_tpu_info().vmem_capacity_bytes)
    except Exception:  # noqa: BLE001 — conservative default: v7x per-TensorCore VMEM
        return 64 * 1024 * 1024


def attention_gene(x, gamma, beta, wqkv_t, wproj_t, bproj, *, num_heads,
                   compute_dtype=jnp.bfloat16, q_tile=None, kv_chunk=None):
    B, N, C = x.shape
    assert C % num_heads == 0
    hd = C // num_heads
    scale = hd ** (-0.5)

    tq = q_tile or _pick_q_tile(N)
    assert N % tq == 0
    n_q_tiles = N // tq
    chunk = kv_chunk or _pick_kv_chunk(N)
    assert N % chunk == 0

    # Host-side weight prep (fused with the compute_dtype cast => free):
    #  * softmax scale * 80 folded into the q projection weights,
    #  * Wq / Wproj re-laid out per head so the in-kernel head fori_loop can
    #    index the leading axis (no per-tile reshape / transpose in the kernel).
    wq_r = (wqkv_t[:, :C] * (scale * SCALE_GENE)).reshape(C, num_heads, hd)
    wq_r = jnp.transpose(wq_r, (1, 0, 2)).astype(compute_dtype)          # (H, C, hd)
    wk_c = wqkv_t[:, C:2 * C].astype(compute_dtype)                      # (C, C)
    wv_c = wqkv_t[:, 2 * C:].astype(compute_dtype)                       # (C, C)
    wproj_r = wproj_t.reshape(num_heads, hd, C).astype(compute_dtype)    # (H, hd, C)
    # TODO(synk): optionally accept/cast x to bf16 at this boundary for v7x
    #             (halves the resident x slab); LN math stays f32 in-kernel.

    approx_recip = bool(jnp.dtype(compute_dtype) != jnp.dtype(jnp.float32))

    kernel = functools.partial(
        attention_gene_kernel, num_heads=num_heads, tq=tq, kv_chunk=chunk,
        compute_dtype=compute_dtype, approx_recip=approx_recip)

    # Advisory cost estimate for the XLA scheduler.
    flops = int(2 * B * N * C * 3 * C          # QKV projection
                + 4 * B * N * N * C            # QK^T + PV
                + 2 * B * N * C * C)           # output projection
    isz = jnp.dtype(compute_dtype).itemsize
    x_bytes = jnp.dtype(x.dtype).itemsize
    cost = pl.CostEstimate(
        flops=flops,
        transcendentals=int(B * num_heads * N * N),
        bytes_accessed=int(B * N * C * x_bytes          # x
                           + 4 * C * C * isz            # Wq + Wk + Wv + Wproj
                           + B * N * C * x_bytes))      # output

    # VMEM footprint estimate (includes chunk temporaries, per-head softmax set,
    # and lane padding of the (H, N, hd) scratch when hd < 128).
    single_buf = _single_buffer_supported()
    hd_pad = -(-hd // 128) * 128
    bufs = 1 if single_buf else 2
    vmem_est = int(
        bufs * N * C * x_bytes                      # x slab
        + bufs * 4 * C * C * isz                    # weights
        + 2 * num_heads * N * hd_pad * isz          # K / V scratch
        + 2 * tq * C * x_bytes                      # double-buffered out block
        + 4 * chunk * C * 4                         # qi==0 chunk temporaries (f32)
        + 3 * tq * N * 4 + tq * N * isz             # one head's logits / probs
        + 6 * tq * C * 4)                           # xq / acc / misc per-tile temps

    # NOTE: the q-tile axis must stay "arbitrary" (sequential) because the K/V
    # scratch written at qi == 0 is reused by later tiles of the same batch.
    params = dict(dimension_semantics=("parallel", "arbitrary"))
    if vmem_est > 12 * 1024 * 1024:                 # v5e scoped default is 16 MiB
        cap = _vmem_capacity_bytes()
        params["vmem_limit_bytes"] = min(int(vmem_est * 1.3), int(cap * 0.9))

    def spec(shape, index_map, *, single=False):
        if single and single_buf:
            return pl.BlockSpec(shape, index_map, pipeline_mode=pl.Buffered(1))
        return pl.BlockSpec(shape, index_map)

    in_specs = [
        spec((1, N, C), lambda b, q: (b, 0, 0), single=True),           # x slab / batch
        spec((1, C), lambda b, q: (0, 0), single=True),                 # LN gamma
        spec((1, C), lambda b, q: (0, 0), single=True),                 # LN beta
        spec((num_heads, C, hd), lambda b, q: (0, 0, 0), single=True),  # Wq (per head)
        spec((C, C), lambda b, q: (0, 0), single=True),                 # Wk
        spec((C, C), lambda b, q: (0, 0), single=True),                 # Wv
        spec((num_heads, hd, C), lambda b, q: (0, 0, 0), single=True),  # Wproj (per head)
        spec((1, C), lambda b, q: (0, 0), single=True),                 # b_proj
    ]

    return pl.pallas_call(
        kernel,
        out_shape=jax.ShapeDtypeStruct((B, N, C), x.dtype),
        grid_spec=pltpu.PrefetchScalarGridSpec(
            num_scalar_prefetch=0,
            grid=(B, n_q_tiles),
            in_specs=in_specs,
            out_specs=pl.BlockSpec((1, tq, C), lambda b, q: (b, q, 0)),
            scratch_shapes=[
                pltpu.VMEM((num_heads, N, hd), compute_dtype),   # K (per head)
                pltpu.VMEM((num_heads, N, hd), compute_dtype),   # V (per head)
            ],
        ),
        compiler_params=pltpu.CompilerParams(**params),
        cost_estimate=cost,
    )(x, gamma, beta, wq_r, wk_c, wv_c, wproj_r, bproj)


def attention_gene_reference(x, gamma, beta, wqkv_t, wproj_t, bproj, *, num_heads):
    """Pure-JAX reference mirroring the PyTorch forward."""
    B, N, C = x.shape
    head_dim = C // num_heads
    scale = head_dim ** (-0.5)

    mean = jnp.mean(x, axis=-1, keepdims=True)
    var = jnp.mean((x - mean) ** 2, axis=-1, keepdims=True)
    xn = (x - mean) / jnp.sqrt(var + LN_EPS) * gamma[0] + beta[0]

    qkv = xn @ wqkv_t                                          # (B, N, 3C)
    qkv = qkv.reshape(B, N, 3, num_heads, head_dim).transpose(2, 0, 3, 1, 4)
    q, k, v = qkv[0], qkv[1], qkv[2]                           # (B, H, N, hd)
    attn = (q @ jnp.swapaxes(k, -2, -1)) * scale * SCALE_GENE
    attn = jax.nn.softmax(attn, axis=-1)
    out = (attn @ v).transpose(0, 2, 1, 3).reshape(B, N, C)
    return out @ wproj_t + bproj[0]


if __name__ == "__main__":
    B, N, C = 2, 16, 32
    num_heads = 8

    key = jax.random.PRNGKey(0)
    kx, kqkv, kproj, kb, kg = jax.random.split(key, 5)

    x = jax.random.normal(kx, (B, N, C), dtype=jnp.float32)

    # Deterministic synthetic parameters (shapes from nn.Module __init__).
    gamma = jnp.ones((1, C), dtype=jnp.float32) + 0.01 * jax.random.normal(kg, (1, C))
    beta = jnp.zeros((1, C), dtype=jnp.float32)
    wqkv_t = 0.05 * jax.random.normal(kqkv, (C, 3 * C), dtype=jnp.float32)   # W_qkv^T
    wproj_t = 0.05 * jax.random.normal(kproj, (C, C), dtype=jnp.float32)     # W_proj^T
    bproj = 0.01 * jax.random.normal(kb, (1, C), dtype=jnp.float32)

    ref = attention_gene_reference(x, gamma, beta, wqkv_t, wproj_t, bproj,
                                   num_heads=num_heads)

    # Small q_tile / kv_chunk so the multi-tile and chunked-precompute paths are
    # actually exercised at this toy size.

    # 1) f32 matmul path — exact reciprocal, tight numerical check.
    out_f32 = attention_gene(x, gamma, beta, wqkv_t, wproj_t, bproj,
                             num_heads=num_heads, compute_dtype=jnp.float32,
                             q_tile=8, kv_chunk=8)
    out_f32 = jax.block_until_ready(out_f32)
    assert out_f32.shape == (B, N, C)
    err_f32 = float(jnp.max(jnp.abs(out_f32 - ref)))
    assert jnp.allclose(out_f32, ref, atol=2e-3, rtol=2e-3), err_f32

    # 2) bf16 matmul path (default, MXU-friendly) — loose check as expected
    #    from bf16 operand rounding + approx reciprocal.
    out_bf16 = attention_gene(x, gamma, beta, wqkv_t, wproj_t, bproj,
                              num_heads=num_heads, compute_dtype=jnp.bfloat16,
                              q_tile=8, kv_chunk=8)
    out_bf16 = jax.block_until_ready(out_bf16)
    assert out_bf16.shape == (B, N, C)
    err_bf16 = float(jnp.max(jnp.abs(out_bf16 - ref)))
    assert jnp.allclose(out_bf16, ref, atol=8e-2, rtol=8e-2), err_bf16

    print("KERNEL_OK")
</pallas_src>

<mosaic_0001>
module attributes {stable_mosaic.version = 11 : i64} {
  func.func @_copy(%arg0: i32, %arg1: memref<8x128xf32, #tpu.memory_space<vmem>>, %arg2: memref<8x128xf32, #tpu.memory_space<vmem>>) attributes {dimension_semantics = [#tpu.dimension_semantics<arbitrary>], iteration_bounds = array<i64: 1>, scalar_prefetch = 0 : i64, scratch_operands = 0 : i64, tpu.core_type = #tpu.core_type<tc>, window_params = [{pipeline_mode = #tpu.pipeline_mode<synchronous>, transform_indices = @transform_0, window_bounds = array<i64: 8, 128>}, {pipeline_mode = #tpu.pipeline_mode<synchronous>, transform_indices = @transform_1, window_bounds = array<i64: 8, 128>}]} {
    %c0 = arith.constant 0 : index
    %c0_0 = arith.constant 0 : index
    %0 = vector.load %arg1[%c0, %c0_0] : memref<8x128xf32, #tpu.memory_space<vmem>>, vector<8x128xf32>
    %c0_1 = arith.constant 0 : index
    %c0_2 = arith.constant 0 : index
    %1 = vector.load %arg2[%c0_1, %c0_2] : memref<8x128xf32, #tpu.memory_space<vmem>>, vector<8x128xf32>
    tpu.vector_store %arg2[%c0_1, %c0_2], %0 {strides = array<i32>} : memref<8x128xf32, #tpu.memory_space<vmem>>, vector<8x128xf32>,
    return
  }
  func.func @transform_0(%arg0: i32) -> (i32, i32) {
    %c0_i32 = arith.constant 0 : i32
    %c0_i32_0 = arith.constant 0 : i32
    %c0_i32_1 = arith.constant 0 : i32
    return %c0_i32, %c0_i32_0 : i32, i32
  }
  func.func @transform_1(%arg0: i32) -> (i32, i32) {
    %c0_i32 = arith.constant 0 : i32
    %c0_i32_0 = arith.constant 0 : i32
    %c0_i32_1 = arith.constant 0 : i32
    return %c0_i32, %c0_i32_0 : i32, i32
  }
}

module attributes {stable_mosaic.version = 11 : i64} {
  func.func @attention_gene_kernel(%arg0: i32, %arg1: i32, %arg2: memref<1x16x32xf32, #tpu.memory_space<vmem>>, %arg3: memref<1x32xf32, #tpu.memory_space<vmem>>, %arg4: memref<1x32xf32, #tpu.memory_space<vmem>>, %arg5: memref<8x32x4xf32, #tpu.memory_space<vmem>>, %arg6: memref<32x32xf32, #tpu.memory_space<vmem>>, %arg7: memref<32x32xf32, #tpu.memory_space<vmem>>, %arg8: memref<8x4x32xf32, #tpu.memory_space<vmem>>, %arg9: memref<1x32xf32, #tpu.memory_space<vmem>>, %arg10: memref<1x8x32xf32, #tpu.memory_space<vmem>>, %arg11: memref<8x16x4xf32, #tpu.memory_space<vmem>>, %arg12: memref<8x16x4xf32, #tpu.memory_space<vmem>>) attributes {dimension_semantics = [#tpu.dimension_semantics<parallel>, #tpu.dimension_semantics<arbitrary>], iteration_bounds = array<i64: 2, 2>, scalar_prefetch = 0 : i64, scratch_operands = 2 : i64, tpu.core_type = #tpu.core_type<tc>, window_params = [{transform_indices = @transform_0, window_bounds = array<i64: 1, 16, 32>}, {pipeline_mode = #tpu.pipeline_mode<synchronous>, transform_indices = @transform_1, window_bounds = array<i64: 1, 32>}, {pipeline_mode = #tpu.pipeline_mode<synchronous>, transform_indices = @transform_2, window_bounds = array<i64: 1, 32>}, {pipeline_mode = #tpu.pipeline_mode<synchronous>, transform_indices = @transform_3, window_bounds = array<i64: 8, 32, 4>}, {pipeline_mode = #tpu.pipeline_mode<synchronous>, transform_indices = @transform_4, window_bounds = array<i64: 32, 32>}, {pipeline_mode = #tpu.pipeline_mode<synchronous>, transform_indices = @transform_5, window_bounds = array<i64: 32, 32>}, {pipeline_mode = #tpu.pipeline_mode<synchronous>, transform_indices = @transform_6, window_bounds = array<i64: 8, 4, 32>}, {pipeline_mode = #tpu.pipeline_mode<synchronous>, transform_indices = @transform_7, window_bounds = array<i64: 1, 32>}, {transform_indices = @transform_8, window_bounds = array<i64: 1, 8, 32>}]} {
    %c0 = arith.constant 0 : index
    %c0_0 = arith.constant 0 : index
    %0 = vector.load %arg3[%c0, %c0_0] : memref<1x32xf32, #tpu.memory_space<vmem>>, vector<1x32xf32>
    %c0_1 = arith.constant 0 : index
    %c0_2 = arith.constant 0 : index
    %1 = vector.load %arg4[%c0_1, %c0_2] : memref<1x32xf32, #tpu.memory_space<vmem>>, vector<1x32xf32>
    %c0_i32 = arith.constant 0 : i32
    %2 = arith.cmpi eq, %arg1, %c0_i32 : i32
    %3 = arith.extui %2 : i1 to i32
    %c0_i32_3 = arith.constant 0 : i32
    %4 = arith.cmpi ne, %3, %c0_i32_3 : i32
    scf.if %4 {
      %c0_i32_18 = arith.constant 0 : i32
      %c2_i32 = arith.constant 2 : i32
      %38 = arith.addi %c0_i32_18, %c2_i32 : i32
      %c1_i32_19 = arith.constant 1 : i32
      scf.for %arg13 = %c0_i32_18 to %38 step %c1_i32_19  : i32 {
        %c1_i32_21 = arith.constant 1 : i32
        %39 = arith.muli %arg13, %c1_i32_21 : i32
        %c0_i32_22 = arith.constant 0 : i32
        %40 = arith.addi %c0_i32_22, %39 : i32
        %c8_i32_23 = arith.constant 8 : i32
        %41 = arith.muli %40, %c8_i32_23 : i32
        %42 = tpu.assume_multiple %41, 8 : i32
        %c0_24 = arith.constant 0 : index
        %43 = arith.index_cast %42 : i32 to index
        %c0_25 = arith.constant 0 : index
        %44 = vector.load %arg2[%c0_24, %43, %c0_25] : memref<1x16x32xf32, #tpu.memory_space<vmem>>, vector<1x8x32xf32>
        %45 = vector.shape_cast %44 : vector<1x8x32xf32> to vector<8x32xf32>
        %cst_26 = arith.constant dense<0.000000e+00> : vector<8xf32>
        %46 = vector.multi_reduction <add>, %45, %cst_26 [1] : vector<8x32xf32> to vector<8xf32>
        %47 = vector.shape_cast %46 : vector<8xf32> to vector<8x1xf32>
        %cst_27 = arith.constant 3.200000e+01 : f32
        %48 = vector.broadcast %cst_27 : f32 to vector<8x1xf32>
        %49 = arith.divf %47, %48 : vector<8x1xf32>
        %50 = vector.broadcast %49 : vector<8x1xf32> to vector<8x32xf32>
        %51 = arith.subf %45, %50 : vector<8x32xf32>
        %52 = arith.mulf %51, %51 : vector<8x32xf32>
        %cst_28 = arith.constant dense<0.000000e+00> : vector<8xf32>
        %53 = vector.multi_reduction <add>, %52, %cst_28 [1] : vector<8x32xf32> to vector<8xf32>
        %54 = vector.shape_cast %53 : vector<8xf32> to vector<8x1xf32>
        %cst_29 = arith.constant 3.200000e+01 : f32
        %55 = vector.broadcast %cst_29 : f32 to vector<8x1xf32>
        %56 = arith.divf %54, %55 : vector<8x1xf32>
        %cst_30 = arith.constant 9.99999974E-6 : f32
        %57 = vector.broadcast %cst_30 : f32 to vector<8x1xf32>
        %58 = arith.addf %56, %57 : vector<8x1xf32>
        %59 = math.rsqrt %58 : vector<8x1xf32>
        %60 = vector.broadcast %59 : vector<8x1xf32> to vector<8x32xf32>
        %61 = arith.mulf %51, %60 : vector<8x32xf32>
        %62 = vector.broadcast %0 : vector<1x32xf32> to vector<8x32xf32>
        %63 = arith.mulf %61, %62 : vector<8x32xf32>
        %64 = vector.broadcast %1 : vector<1x32xf32> to vector<8x32xf32>
        %65 = arith.addf %63, %64 : vector<8x32xf32>
        %c0_31 = arith.constant 0 : index
        %c0_32 = arith.constant 0 : index
        %66 = vector.load %arg6[%c0_31, %c0_32] : memref<32x32xf32, #tpu.memory_space<vmem>>, vector<32x32xf32>
        %cst_33 = arith.constant dense<0.000000e+00> : vector<8x32xf32>
        %67 = tpu.matmul %65, %66, %cst_33 {dimension_numbers = #tpu.dot_dimension_numbers<[1], [0], [0], [1], [0, 0, 1, 1], [], []>} : vector<8x32xf32>, vector<32x32xf32>, vector<8x32xf32> -> vector<8x32xf32>
        %c0_34 = arith.constant 0 : index
        %c0_35 = arith.constant 0 : index
        %68 = vector.load %arg7[%c0_34, %c0_35] : memref<32x32xf32, #tpu.memory_space<vmem>>, vector<32x32xf32>
        %cst_36 = arith.constant dense<0.000000e+00> : vector<8x32xf32>
        %69 = tpu.matmul %65, %68, %cst_36 {dimension_numbers = #tpu.dot_dimension_numbers<[1], [0], [0], [1], [0, 0, 1, 1], [], []>} : vector<8x32xf32>, vector<32x32xf32>, vector<8x32xf32> -> vector<8x32xf32>
        %70 = vector.extract_strided_slice %67 {offsets = [0, 0], sizes = [8, 4], strides = [1, 1]} : vector<8x32xf32> to vector<8x4xf32>
        %c0_37 = arith.constant 0 : index
        %71 = arith.index_cast %42 : i32 to index
        %c0_38 = arith.constant 0 : index
        %72 = vector.load %arg11[%c0_37, %71, %c0_38] : memref<8x16x4xf32, #tpu.memory_space<vmem>>, vector<1x8x4xf32>
        %73 = vector.shape_cast %72 : vector<1x8x4xf32> to vector<8x4xf32>
        %74 = vector.shape_cast %70 : vector<8x4xf32> to vector<1x8x4xf32>
        tpu.vector_store %arg11[%c0_37, %71, %c0_38], %74 {strides = array<i32>} : memref<8x16x4xf32, #tpu.memory_space<vmem>>, vector<1x8x4xf32>,
        %75 = vector.extract_strided_slice %69 {offsets = [0, 0], sizes = [8, 4], strides = [1, 1]} : vector<8x32xf32> to vector<8x4xf32>
        %c0_39 = arith.constant 0 : index
        %76 = arith.index_cast %42 : i32 to index
        %c0_40 = arith.constant 0 : index
        %77 = vector.load %arg12[%c0_39, %76, %c0_40] : memref<8x16x4xf32, #tpu.memory_space<vmem>>, vector<1x8x4xf32>
        %78 = vector.shape_cast %77 : vector<1x8x4xf32> to vector<8x4xf32>
        %79 = vector.shape_cast %75 : vector<8x4xf32> to vector<1x8x4xf32>
        tpu.vector_store %arg12[%c0_39, %76, %c0_40], %79 {strides = array<i32>} : memref<8x16x4xf32, #tpu.memory_space<vmem>>, vector<1x8x4xf32>,
        %80 = vector.extract_strided_slice %67 {offsets = [0, 4], sizes = [8, 4], strides = [1, 1]} : vector<8x32xf32> to vector<8x4xf32>
        %c1 = arith.constant 1 : index
        %81 = arith.index_cast %42 : i32 to index
        %c0_41 = arith.constant 0 : index
        %82 = vector.load %arg11[%c1, %81, %c0_41] : memref<8x16x4xf32, #tpu.memory_space<vmem>>, vector<1x8x4xf32>
        %83 = vector.shape_cast %82 : vector<1x8x4xf32> to vector<8x4xf32>
        %84 = vector.shape_cast %80 : vector<8x4xf32> to vector<1x8x4xf32>
        tpu.vector_store %arg11[%c1, %81, %c0_41], %84 {strides = array<i32>} : memref<8x16x4xf32, #tpu.memory_space<vmem>>, vector<1x8x4xf32>,
        %85 = vector.extract_strided_slice %69 {offsets = [0, 4], sizes = [8, 4], strides = [1, 1]} : vector<8x32xf32> to vector<8x4xf32>
        %c1_42 = arith.constant 1 : index
        %86 = arith.index_cast %42 : i32 to index
        %c0_43 = arith.constant 0 : index
        %87 = vector.load %arg12[%c1_42, %86, %c0_43] : memref<8x16x4xf32, #tpu.memory_space<vmem>>, vector<1x8x4xf32>
        %88 = vector.shape_cast %87 : vector<1x8x4xf32> to vector<8x4xf32>
        %89 = vector.shape_cast %85 : vector<8x4xf32> to vector<1x8x4xf32>
        tpu.vector_store %arg12[%c1_42, %86, %c0_43], %89 {strides = array<i32>} : memref<8x16x4xf32, #tpu.memory_space<vmem>>, vector<1x8x4xf32>,
        %90 = vector.extract_strided_slice %67 {offsets = [0, 8], sizes = [8, 4], strides = [1, 1]} : vector<8x32xf32> to vector<8x4xf32>
        %c2 = arith.constant 2 : index
        %91 = arith.index_cast %42 : i32 to index
        %c0_44 = arith.constant 0 : index
        %92 = vector.load %arg11[%c2, %91, %c0_44] : memref<8x16x4xf32, #tpu.memory_space<vmem>>, vector<1x8x4xf32>
        %93 = vector.shape_cast %92 : vector<1x8x4xf32> to vector<8x4xf32>
        %94 = vector.shape_cast %90 : vector<8x4xf32> to vector<1x8x4xf32>
        tpu.vector_store %arg11[%c2, %91, %c0_44], %94 {strides = array<i32>} : memref<8x16x4xf32, #tpu.memory_space<vmem>>, vector<1x8x4xf32>,
        %95 = vector.extract_strided_slice %69 {offsets = [0, 8], sizes = [8, 4], strides = [1, 1]} : vector<8x32xf32> to vector<8x4xf32>
        %c2_45 = arith.constant 2 : index
        %96 = arith.index_cast %42 : i32 to index
        %c0_46 = arith.constant 0 : index
        %97 = vector.load %arg12[%c2_45, %96, %c0_46] : memref<8x16x4xf32, #tpu.memory_space<vmem>>, vector<1x8x4xf32>
        %98 = vector.shape_cast %97 : vector<1x8x4xf32> to vector<8x4xf32>
        %99 = vector.shape_cast %95 : vector<8x4xf32> to vector<1x8x4xf32>
        tpu.vector_store %arg12[%c2_45, %96, %c0_46], %99 {strides = array<i32>} : memref<8x16x4xf32, #tpu.memory_space<vmem>>, vector<1x8x4xf32>,
        %100 = vector.extract_strided_slice %67 {offsets = [0, 12], sizes = [8, 4], strides = [1, 1]} : vector<8x32xf32> to vector<8x4xf32>
        %c3 = arith.constant 3 : index
        %101 = arith.index_cast %42 : i32 to index
        %c0_47 = arith.constant 0 : index
        %102 = vector.load %arg11[%c3, %101, %c0_47] : memref<8x16x4xf32, #tpu.memory_space<vmem>>, vector<1x8x4xf32>
        %103 = vector.shape_cast %102 : vector<1x8x4xf32> to vector<8x4xf32>
        %104 = vector.shape_cast %100 : vector<8x4xf32> to vector<1x8x4xf32>
        tpu.vector_store %arg11[%c3, %101, %c0_47], %104 {strides = array<i32>} : memref<8x16x4xf32, #tpu.memory_space<vmem>>, vector<1x8x4xf32>,
        %105 = vector.extract_strided_slice %69 {offsets = [0, 12], sizes = [8, 4], strides = [1, 1]} : vector<8x32xf32> to vector<8x4xf32>
        %c3_48 = arith.constant 3 : index
        %106 = arith.index_cast %42 : i32 to index
        %c0_49 = arith.constant 0 : index
        %107 = vector.load %arg12[%c3_48, %106, %c0_49] : memref<8x16x4xf32, #tpu.memory_space<vmem>>, vector<1x8x4xf32>
        %108 = vector.shape_cast %107 : vector<1x8x4xf32> to vector<8x4xf32>
        %109 = vector.shape_cast %105 : vector<8x4xf32> to vector<1x8x4xf32>
        tpu.vector_store %arg12[%c3_48, %106, %c0_49], %109 {strides = array<i32>} : memref<8x16x4xf32, #tpu.memory_space<vmem>>, vector<1x8x4xf32>,
        %110 = vector.extract_strided_slice %67 {offsets = [0, 16], sizes = [8, 4], strides = [1, 1]} : vector<8x32xf32> to vector<8x4xf32>
        %c4 = arith.constant 4 : index
        %111 = arith.index_cast %42 : i32 to index
        %c0_50 = arith.constant 0 : index
        %112 = vector.load %arg11[%c4, %111, %c0_50] : memref<8x16x4xf32, #tpu.memory_space<vmem>>, vector<1x8x4xf32>
        %113 = vector.shape_cast %112 : vector<1x8x4xf32> to vector<8x4xf32>
        %114 = vector.shape_cast %110 : vector<8x4xf32> to vector<1x8x4xf32>
        tpu.vector_store %arg11[%c4, %111, %c0_50], %114 {strides = array<i32>} : memref<8x16x4xf32, #tpu.memory_space<vmem>>, vector<1x8x4xf32>,
        %115 = vector.extract_strided_slice %69 {offsets = [0, 16], sizes = [8, 4], strides = [1, 1]} : vector<8x32xf32> to vector<8x4xf32>
        %c4_51 = arith.constant 4 : index
        %116 = arith.index_cast %42 : i32 to index
        %c0_52 = arith.constant 0 : index
        %117 = vector.load %arg12[%c4_51, %116, %c0_52] : memref<8x16x4xf32, #tpu.memory_space<vmem>>, vector<1x8x4xf32>
        %118 = vector.shape_cast %117 : vector<1x8x4xf32> to vector<8x4xf32>
        %119 = vector.shape_cast %115 : vector<8x4xf32> to vector<1x8x4xf32>
        tpu.vector_store %arg12[%c4_51, %116, %c0_52], %119 {strides = array<i32>} : memref<8x16x4xf32, #tpu.memory_space<vmem>>, vector<1x8x4xf32>,
        %120 = vector.extract_strided_slice %67 {offsets = [0, 20], sizes = [8, 4], strides = [1, 1]} : vector<8x32xf32> to vector<8x4xf32>
        %c5 = arith.constant 5 : index
        %121 = arith.index_cast %42 : i32 to index
        %c0_53 = arith.constant 0 : index
        %122 = vector.load %arg11[%c5, %121, %c0_53] : memref<8x16x4xf32, #tpu.memory_space<vmem>>, vector<1x8x4xf32>
        %123 = vector.shape_cast %122 : vector<1x8x4xf32> to vector<8x4xf32>
        %124 = vector.shape_cast %120 : vector<8x4xf32> to vector<1x8x4xf32>
        tpu.vector_store %arg11[%c5, %121, %c0_53], %124 {strides = array<i32>} : memref<8x16x4xf32, #tpu.memory_space<vmem>>, vector<1x8x4xf32>,
        %125 = vector.extract_strided_slice %69 {offsets = [0, 20], sizes = [8, 4], strides = [1, 1]} : vector<8x32xf32> to vector<8x4xf32>
        %c5_54 = arith.constant 5 : index
        %126 = arith.index_cast %42 : i32 to index
        %c0_55 = arith.constant 0 : index
        %127 = vector.load %arg12[%c5_54, %126, %c0_55] : memref<8x16x4xf32, #tpu.memory_space<vmem>>, vector<1x8x4xf32>
        %128 = vector.shape_cast %127 : vector<1x8x4xf32> to vector<8x4xf32>
        %129 = vector.shape_cast %125 : vector<8x4xf32> to vector<1x8x4xf32>
        tpu.vector_store %arg12[%c5_54, %126, %c0_55], %129 {strides = array<i32>} : memref<8x16x4xf32, #tpu.memory_space<vmem>>, vector<1x8x4xf32>,
        %130 = vector.extract_strided_slice %67 {offsets = [0, 24], sizes = [8, 4], strides = [1, 1]} : vector<8x32xf32> to vector<8x4xf32>
        %c6 = arith.constant 6 : index
        %131 = arith.index_cast %42 : i32 to index
        %c0_56 = arith.constant 0 : index
        %132 = vector.load %arg11[%c6, %131, %c0_56] : memref<8x16x4xf32, #tpu.memory_space<vmem>>, vector<1x8x4xf32>
        %133 = vector.shape_cast %132 : vector<1x8x4xf32> to vector<8x4xf32>
        %134 = vector.shape_cast %130 : vector<8x4xf32> to vector<1x8x4xf32>
        tpu.vector_store %arg11[%c6, %131, %c0_56], %134 {strides = array<i32>} : memref<8x16x4xf32, #tpu.memory_space<vmem>>, vector<1x8x4xf32>,
        %135 = vector.extract_strided_slice %69 {offsets = [0, 24], sizes = [8, 4], strides = [1, 1]} : vector<8x32xf32> to vector<8x4xf32>
        %c6_57 = arith.constant 6 : index
        %136 = arith.index_cast %42 : i32 to index
        %c0_58 = arith.constant 0 : index
        %137 = vector.load %arg12[%c6_57, %136, %c0_58] : memref<8x16x4xf32, #tpu.memory_space<vmem>>, vector<1x8x4xf32>
        %138 = vector.shape_cast %137 : vector<1x8x4xf32> to vector<8x4xf32>
        %139 = vector.shape_cast %135 : vector<8x4xf32> to vector<1x8x4xf32>
        tpu.vector_store %arg12[%c6_57, %136, %c0_58], %139 {strides = array<i32>} : memref<8x16x4xf32, #tpu.memory_space<vmem>>, vector<1x8x4xf32>,
        %140 = vector.extract_strided_slice %67 {offsets = [0, 28], sizes = [8, 4], strides = [1, 1]} : vector<8x32xf32> to vector<8x4xf32>
        %c7 = arith.constant 7 : index
        %141 = arith.index_cast %42 : i32 to index
        %c0_59 = arith.constant 0 : index
        %142 = vector.load %arg11[%c7, %141, %c0_59] : memref<8x16x4xf32, #tpu.memory_space<vmem>>, vector<1x8x4xf32>
        %143 = vector.shape_cast %142 : vector<1x8x4xf32> to vector<8x4xf32>
        %144 = vector.shape_cast %140 : vector<8x4xf32> to vector<1x8x4xf32>
        tpu.vector_store %arg11[%c7, %141, %c0_59], %144 {strides = array<i32>} : memref<8x16x4xf32, #tpu.memory_space<vmem>>, vector<1x8x4xf32>,
        %145 = vector.extract_strided_slice %69 {offsets = [0, 28], sizes = [8, 4], strides = [1, 1]} : vector<8x32xf32> to vector<8x4xf32>
        %c7_60 = arith.constant 7 : index
        %146 = arith.index_cast %42 : i32 to index
        %c0_61 = arith.constant 0 : index
        %147 = vector.load %arg12[%c7_60, %146, %c0_61] : memref<8x16x4xf32, #tpu.memory_space<vmem>>, vector<1x8x4xf32>
        %148 = vector.shape_cast %147 : vector<1x8x4xf32> to vector<8x4xf32>
        %149 = vector.shape_cast %145 : vector<8x4xf32> to vector<1x8x4xf32>
        tpu.vector_store %arg12[%c7_60, %146, %c0_61], %149 {strides = array<i32>} : memref<8x16x4xf32, #tpu.memory_space<vmem>>, vector<1x8x4xf32>,
      }
      %c2_i32_20 = arith.constant 2 : i32
    } else {
    }
    %c8_i32 = arith.constant 8 : i32
    %5 = arith.muli %arg1, %c8_i32 : i32
    %6 = tpu.assume_multiple %5, 8 : i32
    %c0_4 = arith.constant 0 : index
    %7 = arith.index_cast %6 : i32 to index
    %c0_5 = arith.constant 0 : index
    %8 = vector.load %arg2[%c0_4, %7, %c0_5] : memref<1x16x32xf32, #tpu.memory_space<vmem>>, vector<1x8x32xf32>
    %9 = vector.shape_cast %8 : vector<1x8x32xf32> to vector<8x32xf32>
    %cst = arith.constant dense<0.000000e+00> : vector<8xf32>
    %10 = vector.multi_reduction <add>, %9, %cst [1] : vector<8x32xf32> to vector<8xf32>
    %11 = vector.shape_cast %10 : vector<8xf32> to vector<8x1xf32>
    %cst_6 = arith.constant 3.200000e+01 : f32
    %12 = vector.broadcast %cst_6 : f32 to vector<8x1xf32>
    %13 = arith.divf %11, %12 : vector<8x1xf32>
    %14 = vector.broadcast %13 : vector<8x1xf32> to vector<8x32xf32>
    %15 = arith.subf %9, %14 : vector<8x32xf32>
    %16 = arith.mulf %15, %15 : vector<8x32xf32>
    %cst_7 = arith.constant dense<0.000000e+00> : vector<8xf32>
    %17 = vector.multi_reduction <add>, %16, %cst_7 [1] : vector<8x32xf32> to vector<8xf32>
    %18 = vector.shape_cast %17 : vector<8xf32> to vector<8x1xf32>
    %cst_8 = arith.constant 3.200000e+01 : f32
    %19 = vector.broadcast %cst_8 : f32 to vector<8x1xf32>
    %20 = arith.divf %18, %19 : vector<8x1xf32>
    %cst_9 = arith.constant 9.99999974E-6 : f32
    %21 = vector.broadcast %cst_9 : f32 to vector<8x1xf32>
    %22 = arith.addf %20, %21 : vector<8x1xf32>
    %23 = math.rsqrt %22 : vector<8x1xf32>
    %24 = vector.broadcast %23 : vector<8x1xf32> to vector<8x32xf32>
    %25 = arith.mulf %15, %24 : vector<8x32xf32>
    %26 = vector.broadcast %0 : vector<1x32xf32> to vector<8x32xf32>
    %27 = arith.mulf %25, %26 : vector<8x32xf32>
    %28 = vector.broadcast %1 : vector<1x32xf32> to vector<8x32xf32>
    %29 = arith.addf %27, %28 : vector<8x32xf32>
    %c0_10 = arith.constant 0 : index
    %c0_11 = arith.constant 0 : index
    %30 = vector.load %arg9[%c0_10, %c0_11] : memref<1x32xf32, #tpu.memory_space<vmem>>, vector<1x32xf32>
    %31 = vector.shape_cast %30 : vector<1x32xf32> to vector<1x32xf32>
    %32 = vector.broadcast %31 : vector<1x32xf32> to vector<8x32xf32>
    %c0_i32_12 = arith.constant 0 : i32
    %c8_i32_13 = arith.constant 8 : i32
    %33 = arith.addi %c0_i32_12, %c8_i32_13 : i32
    %c1_i32 = arith.constant 1 : i32
    %34 = scf.for %arg13 = %c0_i32_12 to %33 step %c1_i32 iter_args(%arg14 = %32) -> (vector<8x32xf32>)  : i32 {
      %38 = arith.index_cast %arg13 : i32 to index
      %c0_18 = arith.constant 0 : index
      %c0_19 = arith.constant 0 : index
      %39 = vector.load %arg5[%38, %c0_18, %c0_19] : memref<8x32x4xf32, #tpu.memory_space<vmem>>, vector<1x32x4xf32>
      %40 = vector.shape_cast %39 : vector<1x32x4xf32> to vector<32x4xf32>
      %cst_20 = arith.constant dense<0.000000e+00> : vector<8x4xf32>
      %41 = tpu.matmul %29, %40, %cst_20 {dimension_numbers = #tpu.dot_dimension_numbers<[1], [0], [0], [1], [0, 0, 1, 1], [], []>} : vector<8x32xf32>, vector<32x4xf32>, vector<8x4xf32> -> vector<8x4xf32>
      %42 = arith.index_cast %arg13 : i32 to index
      %c0_21 = arith.constant 0 : index
      %c0_22 = arith.constant 0 : index
      %43 = vector.load %arg11[%42, %c0_21, %c0_22] : memref<8x16x4xf32, #tpu.memory_space<vmem>>, vector<1x16x4xf32>
      %44 = vector.shape_cast %43 : vector<1x16x4xf32> to vector<16x4xf32>
      %45 = arith.index_cast %arg13 : i32 to index
      %c0_23 = arith.constant 0 : index
      %c0_24 = arith.constant 0 : index
      %46 = vector.load %arg12[%45, %c0_23, %c0_24] : memref<8x16x4xf32, #tpu.memory_space<vmem>>, vector<1x16x4xf32>
      %47 = vector.shape_cast %46 : vector<1x16x4xf32> to vector<16x4xf32>
      "tpu.trace_start"() <{level = 10 : i32, message = "qd,kd->qk"}> : () -> ()
      %cst_25 = arith.constant dense<0.000000e+00> : vector<8x16xf32>
      %48 = tpu.matmul %41, %44, %cst_25 {dimension_numbers = #tpu.dot_dimension_numbers<[1], [1], [0], [0], [0, 0, 1, 0], [], []>} : vector<8x4xf32>, vector<16x4xf32>, vector<8x16xf32> -> vector<8x16xf32>
      "tpu.trace_stop"() : () -> ()
      %cst_26 = arith.constant dense<0xFF800000> : vector<8xf32>
      %49 = vector.multi_reduction <maximumf>, %48, %cst_26 [1] : vector<8x16xf32> to vector<8xf32>
      %50 = vector.shape_cast %49 : vector<8xf32> to vector<8x1xf32>
      %51 = vector.broadcast %50 : vector<8x1xf32> to vector<8x16xf32>
      %52 = arith.subf %48, %51 : vector<8x16xf32>
      %53 = math.exp %52 : vector<8x16xf32>
      %cst_27 = arith.constant dense<0.000000e+00> : vector<8xf32>
      %54 = vector.multi_reduction <add>, %53, %cst_27 [1] : vector<8x16xf32> to vector<8xf32>
      %55 = vector.shape_cast %54 : vector<8xf32> to vector<8x1xf32>
      %56 = tpu.reciprocal %55 : vector<8x1xf32> -> vector<8x1xf32>
      %57 = vector.broadcast %56 : vector<8x1xf32> to vector<8x16xf32>
      %58 = arith.mulf %53, %57 : vector<8x16xf32>
      %cst_28 = arith.constant dense<0.000000e+00> : vector<8x4xf32>
      %59 = tpu.matmul %58, %47, %cst_28 {dimension_numbers = #tpu.dot_dimension_numbers<[1], [0], [0], [1], [0, 0, 1, 1], [], []>} : vector<8x16xf32>, vector<16x4xf32>, vector<8x4xf32> -> vector<8x4xf32>
      %60 = arith.index_cast %arg13 : i32 to index
      %c0_29 = arith.constant 0 : index
      %c0_30 = arith.constant 0 : index
      %61 = vector.load %arg8[%60, %c0_29, %c0_30] : memref<8x4x32xf32, #tpu.memory_space<vmem>>, vector<1x4x32xf32>
      %62 = vector.shape_cast %61 : vector<1x4x32xf32> to vector<4x32xf32>
      %cst_31 = arith.constant dense<0.000000e+00> : vector<8x32xf32>
      %63 = tpu.matmul %59, %62, %cst_31 {dimension_numbers = #tpu.dot_dimension_numbers<[1], [0], [0], [1], [0, 0, 1, 1], [], []>} : vector<8x4xf32>, vector<4x32xf32>, vector<8x32xf32> -> vector<8x32xf32>
      %64 = arith.addf %arg14, %63 : vector<8x32xf32>
      scf.yield %64 : vector<8x32xf32>
    }
    %c8_i32_14 = arith.constant 8 : i32
    %c0_15 = arith.constant 0 : index
    %c0_16 = arith.constant 0 : index
    %c0_17 = arith.constant 0 : index
    %35 = vector.load %arg10[%c0_15, %c0_16, %c0_17] : memref<1x8x32xf32, #tpu.memory_space<vmem>>, vector<1x8x32xf32>
    %36 = vector.shape_cast %35 : vector<1x8x32xf32> to vector<8x32xf32>
    %37 = vector.shape_cast %34 : vector<8x32xf32> to vector<1x8x32xf32>
    tpu.vector_store %arg10[%c0_15, %c0_16, %c0_17], %37 {strides = array<i32>} : memref<1x8x32xf32, #tpu.memory_space<vmem>>, vector<1x8x32xf32>,
    return
  }
  func.func @transform_0(%arg0: i32, %arg1: i32) -> (i32, i32, i32) {
    %c0_i32 = arith.constant 0 : i32
    %c0_i32_0 = arith.constant 0 : i32
    %c0_i32_1 = arith.constant 0 : i32
    return %arg0, %c0_i32, %c0_i32_0 : i32, i32, i32
  }
  func.func @transform_1(%arg0: i32, %arg1: i32) -> (i32, i32) {
    %c0_i32 = arith.constant 0 : i32
    %c0_i32_0 = arith.constant 0 : i32
    %c0_i32_1 = arith.constant 0 : i32
    return %c0_i32, %c0_i32_0 : i32, i32
  }
  func.func @transform_2(%arg0: i32, %arg1: i32) -> (i32, i32) {
    %c0_i32 = arith.constant 0 : i32
    %c0_i32_0 = arith.constant 0 : i32
    %c0_i32_1 = arith.constant 0 : i32
    return %c0_i32, %c0_i32_0 : i32, i32
  }
  func.func @transform_3(%arg0: i32, %arg1: i32) -> (i32, i32, i32) {
    %c0_i32 = arith.constant 0 : i32
    %c0_i32_0 = arith.constant 0 : i32
    %c0_i32_1 = arith.constant 0 : i32
    %c0_i32_2 = arith.constant 0 : i32
    return %c0_i32, %c0_i32_0, %c0_i32_1 : i32, i32, i32
  }
  func.func @transform_4(%arg0: i32, %arg1: i32) -> (i32, i32) {
    %c0_i32 = arith.constant 0 : i32
    %c0_i32_0 = arith.constant 0 : i32
    %c0_i32_1 = arith.constant 0 : i32
    return %c0_i32, %c0_i32_0 : i32, i32
  }
  func.func @transform_5(%arg0: i32, %arg1: i32) -> (i32, i32) {
    %c0_i32 = arith.constant 0 : i32
    %c0_i32_0 = arith.constant 0 : i32
    %c0_i32_1 = arith.constant 0 : i32
    return %c0_i32, %c0_i32_0 : i32, i32
  }
  func.func @transform_6(%arg0: i32, %arg1: i32) -> (i32, i32, i32) {
    %c0_i32 = arith.constant 0 : i32
    %c0_i32_0 = arith.constant 0 : i32
    %c0_i32_1 = arith.constant 0 : i32
    %c0_i32_2 = arith.constant 0 : i32
    return %c0_i32, %c0_i32_0, %c0_i32_1 : i32, i32, i32
  }
  func.func @transform_7(%arg0: i32, %arg1: i32) -> (i32, i32) {
    %c0_i32 = arith.constant 0 : i32
    %c0_i32_0 = arith.constant 0 : i32
    %c0_i32_1 = arith.constant 0 : i32
    return %c0_i32, %c0_i32_0 : i32, i32
  }
  func.func @transform_8(%arg0: i32, %arg1: i32) -> (i32, i32, i32) {
    %c0_i32 = arith.constant 0 : i32
    %c0_i32_0 = arith.constant 0 : i32
    return %arg0, %arg1, %c0_i32 : i32, i32, i32
  }
}

</mosaic_0001>

<bundles_post_ra>
// kernel: tpu_custom_call.1
= control target key start
LH: loop header
LB: loop body
LE: loop exit
PB: predicated region body
PF: predicated region fallthrough
CT: control target
= control target key end

     0   :  { %6 = vsyncpa [#allocation3], 0  ;;  %s114_s0 = inlined_call_operand.hbm [shape: f32[8,128], index: 0, kind: input, shape index: {}]   ;;  %s115_s1 = inlined_call_operand.hbm [shape: f32[8,128], index: 1, kind: output, shape index: {}]  }
   0x1   :  { %7 = vsyncpa [#allocation4], 0  ;;  %s13_s8 = sshll.u32 %s114_s0, 4  ;;  %s96_s9 = smov [#allocation2]   ;;  %s14_s8 = int_to_ptr.hbm [resolvable:$true] %s13_s8 }
   0x2   :  { %s15_s10 = sshll.u32 %s96_s9, 4  ;;  %s16_s10 = int_to_ptr.vmem [resolvable:$true] %s15_s10 }
   0x3   :  { %18 = dma.hbm_to_vmem [thread:$0]  %s14_s8, 128, %s16_s10, [#allocation3]  }
   0x4   :  { %92 = dma.done.wait [#allocation3], 128  }
   0x5   :  { %93 = vsyncadd [#allocation3], 4294967168  ;;  %s97_s11 = smov [#allocation5]   ;;  %s32_s15 = sshll.u32 %s115_s1, 4  ;;  %v23_v0 = vld [vmem:[#allocation2] sm:$0xff]  ;;  %s33_s15 = int_to_ptr.hbm [resolvable:$true] %s32_s15 }
   0x6   :  { %s30_s12 = sshll.u32 %s97_s11, 4  ;;  %24 = vst [vmem:[#allocation5] sm:$0xff] %v23_v0  ;;  %s31_s12 = int_to_ptr.vmem [resolvable:$true] %s30_s12 }
   0x7   :  { %35 = dma.vmem_to_hbm [thread:$0]  %s31_s12, 128, %s33_s15, [#allocation4]  }
   0x8   :  { %94 = dma.done.wait [#allocation4], 128  }
   0x9   :  { %95 = vsyncadd [#allocation4], 4294967168 }
   0xa   :  { %40 = vsyncpa [#allocation3], 1 }
   0xb   :  { %41 = vsyncpa [#allocation4], 1 }

// kernel: tpu_custom_call.1
= control target key start
LH: loop header
LB: loop body
LE: loop exit
PB: predicated region body
PF: predicated region fallthrough
CT: control target
= control target key end

     0   :  { %s1484_s0 = inlined_call_operand.vmem [shape: f32[2,16,32], index: 0, kind: input, shape index: {}]   ;;  %s1485_s1 = inlined_call_operand.vmem [shape: f32[1,32], index: 1, kind: input, shape index: {}]   ;;  %s1486_s2 = inlined_call_operand.vmem [shape: f32[1,32], index: 2, kind: input, shape index: {}]   ;;  %s1487_s3 = inlined_call_operand.vmem [shape: f32[8,32,4], index: 3, kind: input, shape index: {}]   ;;  %s1488_s4 = inlined_call_operand.vmem [shape: f32[32,32], index: 4, kind: input, shape index: {}]   ;;  %s1489_s5 = inlined_call_operand.vmem [shape: f32[32,32], index: 5, kind: input, shape index: {}]   ;;  %s1490_s6 = inlined_call_operand.vmem [shape: f32[8,4,32], index: 6, kind: input, shape index: {}]   ;;  %s1491_s7 = inlined_call_operand.vmem [shape: f32[1,32], index: 7, kind: input, shape index: {}]   ;;  %s1492_s8 = inlined_call_operand.hbm [shape: f32[2,16,32], index: 8, kind: output, shape index: {}]  }
   0x1   :  { %1497 = sst [smem:[#allocation10_spill]] %s1484_s0 }
   0x2   :  { %1498 = sst [smem:[#allocation11_spill]] %s1485_s1 }
   0x3   :  { %1499 = sst [smem:[#allocation12_spill]] %s1486_s2 }
   0x4   :  { %13 = vsyncpa [#allocation5], 0 }
   0x5   :  { %15 = vsyncpa [#allocation5 + $0x1], 0  ;;  %s1213_s27 = smov 0   ;;  %s1215_s28 = smov 0  }
   0x6   :  { %s1217_s29 = smov 0   ;;  %s1219_s30 = smov 0  }
   0x7   :  { %s1221_s9 = smov 0   ;;  %s1223_s10 = smov 0  }
   0x8   :  { %s1225_s11 = smov 0   ;;  %s1227_s12 = smov 0  }
   0x9 LB: > { %1500 = sst [smem:[#allocation7_spill]] %s1141_s11  ;;  %s865_s13 = sadd.s32 4294967295, %s1145_s12   ;;  %s1145_s12 = sphi %s1227_s12, %s21_s12   ;;  %s1141_s11 = sphi %s1225_s11, %s1514_s11   ;;  %s1137_s10 = sphi %s1223_s10, %s1519_s10   ;;  %s1133_s9 = sphi %s1221_s9, %s1512_s9   ;;  %s1129_s30 = sphi %s1219_s30, %s1518_s30   ;;  %s1125_s29 = sphi %s1217_s29, %s1517_s29   ;;  %s1121_s28 = sphi %s1215_s28, %s1516_s28   ;;  %s1117_s27 = sphi %s1213_s27, %s1515_s27  }
   0xa   : > { %s866_s14 = sadd.s32 4294967294, %s1145_s12   ;;  %s30_s15 = sadd.s32 1, %s1137_s10 }
   0xb   : > { %p31_p0 = scmp.ge.s32.totalorder %s30_s15, 2  ;;  %s33_s16 = sadd.s32 1, %s1141_s11 }
   0xc   : > { %p225_p1 = scmp.ne.s32.totalorder %s1125_s29, %s1121_s28  ;;  %p226_p2 = scmp.eq.s32.totalorder %s865_s13, 3 }
   0xd   : > { %s1521_s15 = smov (%p31_p0, %s30_s15), 0  ;;  %s1523_s16 = smov (!%p31_p0, %s33_s16), %s1141_s11 }
   0xe   : > { %1501 = sst [smem:[#allocation8_spill]] %s1521_s15  ;;  %s211_s17 = ssub.s32 %s1137_s10, %s1521_s15 }
   0xf   : > { %p1264_p3 = por %p226_p2, %p225_p1  ;;  %p35_p4 = scmp.ge.s32.totalorder %s1523_s16, 2 }
  0x10   : > { %p231_p5 = scmp.ne.s32.totalorder %s1121_s28, %s1117_s27  ;;  %p232_p6 = scmp.eq.s32.totalorder %s866_s14, 3 }
  0x11   : > { %p869_p7 = scmp.ge.s32.totalorder %s1145_s12, 1  ;;  %s1525_s16 = smov (%p35_p4, %s1523_s16), 0 }
  0x12   : > { %1503 = sst [smem:[#allocation9_spill]] %s1525_s16  ;;  %p1273_p8 = por %p232_p6, %p231_p5 }
  0x13   : > { %p279_p9 = scmp.lt.s32.totalorder %s1145_s12, 5  ;;  %s210_s20 = ssub.s32 %s1141_s11, %s1525_s16 }
  0x14   : > { %s215_s21 = sadd.s32 1, %s1125_s29  ;;  %s212_s22 = sor.u32 %s211_s17, %s210_s20 }
  0x15   : > { %p280_p10 = pnand %p869_p7, %p279_p9  ;;  %p213_p11 = scmp.eq.s32.totalorder %s212_s22, 0 }
  0x16   : > { %s1496_s24 = sand.u32 (!%p280_p10), 1, %s1121_s28   ;;  %p313_p12 = scmp.lt.s32.totalorder (!%p280_p10), %s1133_s9, 1 }
  0x17   : > { %s1282_s23 = scalar_select %p213_p11, %s1125_s29, %s215_s21  }
  0x18   : > { %283 = sbr.rel (%p280_p10) target bundleno = 1654 (0x676), region = 52  ;;  %s1505_s1 = sld [smem:[#allocation11_spill]] (!%p280_p10) }
  0x19   : > { %s1506_s2 = sld [smem:[#allocation12_spill]] (!%p280_p10)  ;;  %s1298_s17 = sshll.u32 (!%p280_p10), %s1496_s24, 3 }
  0x1a   : > { %s1507_s0 = sld [smem:[#allocation10_spill]] (!%p280_p10)  ;;  %p873_p13 = scmp.ne.s32.totalorder (!%p280_p10), %s1129_s30, 0 }
  0x1d   : > { %s314_s20 = scalar_select %p313_p12, %s1133_s9, 1 }
  0x1e   : > { %v1289_v0 = vld [vmem:[%s1505_s1] sm:$0x1]  ;;  %323 = sbr.rel (%p873_p13) target bundleno = 589 (0x24d), region = 56  ;;  %s1308_s25 = smov (!%p873_p13), 0  }
  0x1f   : > { %v1294_v1 = vld [vmem:[%s1506_s2] sm:$0x1]  ;;  %s921_s21 = sshll.u32 %s314_s20, 4 }
  0x20   : > { %s1304_s15 = scalar_lea.vmem %s1507_s0, %s921_s21 }
  0x23 LB: >> { %s1314_s26 = sshll.u32 %s1149_s25, 3  ;;  %vm333_vm0 = vcmask 261120   ;;  %v1159_v4 = vmov 32.0   ;;  %v374_v16 = vld [vmem:[%s1488_s4 + $0x18] sm:$0xff]  ;;  %v373_v18 = vld [vmem:[%s1488_s4 + $0x10] sm:$0xff]  ;;  %v372_v20 = vld [vmem:[%s1488_s4 + $0x8] sm:$0xff]  ;;  %s1149_s25 = sphi %s1308_s25, %s329_s25  }
  0x24   : >> { %s331_s16 = scalar_lea.vmem %s1304_s15, %s1314_s26  ;;  %1026 = vrcp.f32 %v1159_v4  ;;  %v401_v17 = vld [vmem:[%s1489_s5 + $0x18] sm:$0xff]  ;;  %390 = vmatpush.msra.mxu0 %v374_v16  ;;  %v400_v19 = vld [vmem:[%s1489_s5 + $0x10] sm:$0xff]  ;;  %v399_v21 = vld [vmem:[%s1489_s5 + $0x8] sm:$0xff]  ;;  %v364_v33 = vperm.slane %v1289_v0, 0  ;;  %v368_v36 = vperm.slane %v1294_v1, 0  ;;  %vm423_vm5 = vcmask 31744  }
  0x25   : >> { %v332_v2 = vld [vmem:[%s331_s16] sm:$0xff]  ;;  %414 = vmatpush.msra.mxu1 %v401_v17  ;;  %s1349_s0 = scalar_lea.vmem [#allocation2], %s1314_s26  ;;  %s1160_s1 = smov 116  }
  0x26   : >> { %v334_v3 = vsel %vm333_vm0, %v332_v2, 0.0  ;;  %391 = vmatpush.msra.mxu0 %v373_v18  ;;  %v371_v22 = vld [vmem:[%s1488_s4] sm:$0xff]  ;;  %s1161_s11 = smov 120   ;;  %s1354_s24 = scalar_lea.vmem [#allocation3], %s1314_s26 }
  0x27   : >> { %335 = vadd.xlane.f32.xlu0 %v334_v3  ;;  %415 = vmatpush.msra.mxu1 %v400_v19  ;;  %v398_v23 = vld [vmem:[%s1489_s5] sm:$0xff]  ;;  %s1162_s13 = smov 124   ;;  %s1163_s14 = smov 104  }
  0x28   : >> { %392 = vmatpush.msra.mxu0 %v372_v20  ;;  %s1164_s20 = smov 112   ;;  %s1165_s21 = smov 108  }
  0x29   : >> { %416 = vmatpush.msra.mxu1 %v399_v21  ;;  %s1166_s26 = smov 100   ;;  %s329_s25 = sadd.s32 1, %s1149_s25  }
  0x2a   : >> { %v1027_v5 = vpop.eup %1026  ;;  %393 = vmatpush.msra.mxu0 %v371_v22  ;;  %p326_p0 = scmp.ge.s32.totalorder %s329_s25, 2  }
  0x2b   : >> { %v338_v6 = vmul.f32 32.0, %v1027_v5  ;;  %vm342_vm1 = vweird.f32 %v1027_v5  ;;  %417 = vmatpush.msra.mxu1 %v398_v23 }
  0x2d   : >> { %v339_v7 = vsub.f32 1.0, %v338_v6 }
  0x2f   : >> { %v340_v8 = vmul.f32 %v1027_v5, %v339_v7 }
  0x31   : >> { %v341_v9 = vadd.f32 %v1027_v5, %v340_v8 }
  0x33   : >> { %v343_v10 = vsel %vm342_vm1, %v1027_v5, %v341_v9 }
  0x9a   : >> { %v336_v11 = vpop.xlane.xlu0 %335 }
  0x9b   : >> { %v344_v12 = vmul.f32 %v343_v10, %v336_v11 }
  0x9d   : >> { %v345_v13 = vsub.f32 %v332_v2, %v344_v12 }
  0x9f   : >> { %v346_v14 = vmul.f32 %v345_v13, %v345_v13 }
  0xa1   : >> { %v347_v15 = vsel %vm333_vm0, %v346_v14, 0.0 }
  0xa2   : >> { %348 = vadd.xlane.f32.xlu0 %v347_v15 }
 0x115   : >> { %v349_v24 = vpop.xlane.xlu0 %348 }
 0x116   : >> { %v350_v25 = vmul.f32 %v349_v24, %v343_v10 }
 0x118   : >> { %v351_v26 = vadd.f32 1e-05, %v350_v25 }
 0x11a   : >> { %1028 = vrsqrt.f32 %v351_v26  ;;  %vm358_vm3 = vweird.f32 %v351_v26 }
 0x120   : >> { %v1029_v27 = vpop.eup %1028 }
 0x121   : >> { %v353_v28 = vmul.f32 %v1029_v27, %v351_v26  ;;  %vm359_vm2 = vweird.f32 %v1029_v27 }
 0x122   : >> { %vm360_vm4 = vmor %vm358_vm3, %vm359_vm2 }
 0x123   : >> { %v354_v29 = vmul.f32 %v1029_v27, %v353_v28 }
 0x125   : >> { %v355_v30 = vmul.f32 0.5, %v354_v29 }
 0x127   : >> { %v356_v31 = vsub.f32 1.5, %v355_v30 }
 0x129   : >> { %v357_v32 = vmul.f32 %v1029_v27, %v356_v31 }
 0x12b   : >> { %v361_v34 = vsel %vm360_vm4, %v1029_v27, %v357_v32 }
 0x12c   : >> { %v362_v35 = vmul.f32 %v361_v34, %v345_v13 }
 0x12e   : >> { %v366_v37 = vmul.f32 %v364_v33, %v362_v35 }
 0x130   : >> { %v370_v38 = vadd.f32 %v368_v36, %v366_v37 }
 0x132   : >> { %875 = vmatmul.msk.f32.vlgmr.msra.gmra.mxu0 %vm333_vm0, %v370_v38  ;;  %876 = vmatmul.msk.f32.vlgmr.msra.gmra.mxu1 %vm333_vm0, %v370_v38 }
 0x1af   : >> { %v395_v39 = vpop.f32.mrf.mxu0  ;;  %v419_v40 = vpop.f32.mrf.mxu1 }
 0x1b0   : >> { %424 = vst.msk [vmem:[%s1349_s0] sm:$0xff] %vm423_vm5, %v395_v39  ;;  %451 = vrot.lane.b32.xlu0 %v395_v39, %s1160_s1  ;;  %440 = vrot.lane.b32.xlu2 %v395_v39, %s1161_s11 }
 0x1b1   : >> { %426 = vst.msk [vmem:[%s1354_s24] sm:$0xff] %vm423_vm5, %v419_v40  ;;  %428 = vrot.lane.b32.xlu1 %v395_v39, %s1162_s13 }
 0x1b8   : >> { %490 = vrot.lane.b32.xlu0 %v419_v40, %s1163_s14  ;;  %446 = vrot.lane.b32.xlu2 %v419_v40, %s1161_s11 }
 0x1b9   : >> { %435 = vrot.lane.b32.xlu1 %v419_v40, %s1162_s13 }
 0x1c0   : >> { %462 = vrot.lane.b32.xlu2 %v395_v39, %s1164_s20 }
 0x1c1   : >> { %457 = vrot.lane.b32.xlu1 %v419_v40, %s1160_s1 }
 0x1c8   : >> { %473 = vrot.lane.b32.xlu2 %v395_v39, %s1165_s21 }
 0x1c9   : >> { %468 = vrot.lane.b32.xlu1 %v419_v40, %s1164_s20 }
 0x1d0   : >> { %484 = vrot.lane.b32.xlu2 %v395_v39, %s1163_s14 }
 0x1d1   : >> { %479 = vrot.lane.b32.xlu1 %v419_v40, %s1165_s21 }
 0x1d8   : >> { %501 = vrot.lane.b32.xlu2 %v419_v40, %s1166_s26 }
 0x1d9   : >> { %495 = vrot.lane.b32.xlu1 %v395_v39, %s1166_s26 }
 0x20a   : >> { %v441_v41 = vpop.permute.xlu2 %440 }
 0x20b   : >> { %882 = vst.msk [vmem:[%s1349_s0 + $0x20] sm:$0xff] %vm423_vm5, %v441_v41 }
 0x212   : >> { %v447_v42 = vpop.permute.xlu2 %446 }
 0x213   : >> { %884 = vst.msk [vmem:[%s1354_s24 + $0x20] sm:$0xff] %vm423_vm5, %v447_v42 }
 0x21a   : >> { %v463_v43 = vpop.permute.xlu2 %462 }
 0x21b   : >> { %890 = vst.msk [vmem:[%s1349_s0 + $0x40] sm:$0xff] %vm423_vm5, %v463_v43 }
 0x222   : >> { %v452_v44 = vpop.permute.xlu0 %451  ;;  %v474_v45 = vpop.permute.xlu2 %473 }
 0x223   : >> { %886 = vst.msk [vmem:[%s1349_s0 + $0x30] sm:$0xff] %vm423_vm5, %v452_v44  ;;  %v429_v46 = vpop.permute.xlu1 %428 }
 0x224   : >> { %894 = vst.msk [vmem:[%s1349_s0 + $0x50] sm:$0xff] %vm423_vm5, %v474_v45 }
 0x225   : >> { %878 = vst.msk [vmem:[%s1349_s0 + $0x10] sm:$0xff] %vm423_vm5, %v429_v46 }
 0x22a   : >> { %v491_v47 = vpop.permute.xlu0 %490  ;;  %v485_v48 = vpop.permute.xlu2 %484 }
 0x22b   : >> { %900 = vst.msk [vmem:[%s1354_s24 + $0x60] sm:$0xff] %vm423_vm5, %v491_v47  ;;  %v436_v49 = vpop.permute.xlu1 %435 }
 0x22c   : >> { %898 = vst.msk [vmem:[%s1349_s0 + $0x60] sm:$0xff] %vm423_vm5, %v485_v48 }
 0x22d   : >> { %880 = vst.msk [vmem:[%s1354_s24 + $0x10] sm:$0xff] %vm423_vm5, %v436_v49 }
 0x232   : >> { %v502_v50 = vpop.permute.xlu2 %501 }
 0x233   : >> { %904 = vst.msk [vmem:[%s1354_s24 + $0x70] sm:$0xff] %vm423_vm5, %v502_v50  ;;  %v458_v51 = vpop.permute.xlu1 %457 }
 0x234   : >> { %888 = vst.msk [vmem:[%s1354_s24 + $0x30] sm:$0xff] %vm423_vm5, %v458_v51 }
 0x23b   : >> { %v469_v52 = vpop.permute.xlu1 %468 }
 0x23c   : >> { %892 = vst.msk [vmem:[%s1354_s24 + $0x40] sm:$0xff] %vm423_vm5, %v469_v52 }
 0x243   : >> { %v480_v53 = vpop.permute.xlu1 %479 }
 0x244   : >> { %896 = vst.msk [vmem:[%s1354_s24 + $0x50] sm:$0xff] %vm423_vm5, %v480_v53 }
 0x248   : > { %328 = sbr.rel (!%p326_p0) target bundleno = 35 (0x23), region = 127 }
 0x24b   : >> { %v496_v54 = vpop.permute.xlu1 %495 }
 0x24c   : >> { %902 = vst.msk [vmem:[%s1349_s0 + $0x70] sm:$0xff] %vm423_vm5, %v496_v54 }
 0x24d PF: > { %s905_s22 = sshll.u32 %s1129_s30, 3  ;;  %vm509_vm6 = vcmask 261120   ;;  %v1167_v57 = vmov 32.0   ;;  %v1030_v7 = vld [vmem:[%s1491_s7] ss:$0 sm:$0xff]   ;;  %v540_v17 = vperm.slane %v1289_v0, 0 }
 0x24e   : > { %s507_s16 = scalar_lea.vmem %s1304_s15, %s905_s22  ;;  %1031 = vrcp.f32 %v1167_v57  ;;  %v544_v19 = vperm.slane %v1294_v1, 0  ;;  %s1402_s0 = smov 0  }
 0x24f   : > { %v508_v55 = vld [vmem:[%s507_s16] sm:$0xff] }
 0x250   : > { %v510_v56 = vsel %vm509_vm6, %v508_v55, 0.0 }
 0x251   : > { %511 = vadd.xlane.f32.xlu0 %v510_v56 }
 0x254   : > { %v1032_v58 = vpop.eup %1031 }
 0x255   : > { %v514_v59 = vmul.f32 32.0, %v1032_v58  ;;  %vm518_vm7 = vweird.f32 %v1032_v58 }
 0x257   : > { %v515_v60 = vsub.f32 1.0, %v514_v59 }
 0x259   : > { %v516_v61 = vmul.f32 %v1032_v58, %v515_v60 }
 0x25b   : > { %v517_v62 = vadd.f32 %v1032_v58, %v516_v61 }
 0x25d   : > { %v519_v63 = vsel %vm518_vm7, %v1032_v58, %v517_v62 }
 0x2c4   : > { %v512_v2 = vpop.xlane.xlu0 %511 }
 0x2c5   : > { %v520_v3 = vmul.f32 %v519_v63, %v512_v2 }
 0x2c7   : > { %v521_v4 = vsub.f32 %v508_v55, %v520_v3 }
 0x2c9   : > { %v522_v5 = vmul.f32 %v521_v4, %v521_v4 }
 0x2cb   : > { %v523_v6 = vsel %vm509_vm6, %v522_v5, 0.0 }
 0x2cc   : > { %524 = vadd.xlane.f32.xlu0 %v523_v6 }
 0x33f   : > { %v525_v8 = vpop.xlane.xlu0 %524 }
 0x340   : > { %v526_v9 = vmul.f32 %v525_v8, %v519_v63 }
 0x342   : > { %v527_v10 = vadd.f32 1e-05, %v526_v9 }
 0x344   : > { %1033 = vrsqrt.f32 %v527_v10  ;;  %vm534_vm9 = vweird.f32 %v527_v10 }
 0x34a   : > { %v1034_v11 = vpop.eup %1033 }
 0x34b   : > { %v529_v12 = vmul.f32 %v1034_v11, %v527_v10  ;;  %vm535_vm8 = vweird.f32 %v1034_v11 }
 0x34c   : > { %vm536_vm10 = vmor %vm534_vm9, %vm535_vm8 }
 0x34d   : > { %v530_v13 = vmul.f32 %v1034_v11, %v529_v12 }
 0x34f   : > { %v531_v14 = vmul.f32 0.5, %v530_v13 }
 0x351   : > { %v532_v15 = vsub.f32 1.5, %v531_v14 }
 0x353   : > { %v533_v16 = vmul.f32 %v1034_v11, %v532_v15 }
 0x355   : > { %v537_v18 = vsel %vm536_vm10, %v1034_v11, %v533_v16 }
 0x356   : > { %v538_v20 = vmul.f32 %v537_v18, %v521_v4 }
 0x358   : > { %v542_v21 = vmul.f32 %v540_v17, %v538_v20 }
 0x35a   : > { %v1398_v22 = vadd.f32 %v544_v19, %v542_v21 }
 0x35b LB: >> { %s906_s1 = sshll.u32 %s1157_s0, 5  ;;  %s908_s11 = sshll.u32 %s1157_s0, 4  ;;  %vm594_vm11 = vcmask 31744   ;;  %vm624_vm12 = vcmask 130048   ;;  %vm678_vm1 = vcmask 1043456   ;;  %s1157_s0 = sphi %s1402_s0, %s556_s0   ;;  %v1153_v7 = vphi %v1030_v7, %v1508_v7  }
 0x35c   : >> { %s559_s14 = scalar_lea.vmem %s1487_s3, %s906_s1  ;;  %s588_s20 = scalar_lea.vmem [#allocation2], %s908_s11 }
 0x35d   : >> { %v563_v0 = vld [vmem:[%s559_s14 + $0x18] sm:$0xff]  ;;  %v562_v1 = vld [vmem:[%s559_s14 + $0x10] sm:$0xff]  ;;  %v590_v23 = vld [vmem:[%s588_s20 + $0x8] sm:$0xff]  ;;  %s591_s21 = scalar_lea.vmem [#allocation3], %s908_s11  ;;  %s913_s26 = sshll.u32 %s1157_s0, 2 }
 0x35e   : >> { %579 = vmatpush.msra.mxu0 %v563_v0  ;;  %v561_v24 = vld [vmem:[%s559_s14 + $0x8] sm:$0xff]  ;;  %909 = vmatpush.xpose.msk.msra.mxu1 %vm594_vm11, %v590_v23  ;;  %v589_v25 = vld [vmem:[%s588_s20] sm:$0xff]  ;;  %s673_s15 = scalar_lea.vmem %s1490_s6, %s913_s26  ;;  %s556_s0 = sadd.s32 1, %s1157_s0  }
 0x35f   : >> { %v560_v26 = vld [vmem:[%s559_s14] sm:$0xff]  ;;  %v593_v35 = vld [vmem:[%s591_s21 + $0x8] sm:$0xff]  ;;  %p553_p1 = scmp.ge.s32.totalorder %s556_s0, 8  }
 0x360   : >> { %580 = vmatpush.msra.mxu0 %v562_v1  ;;  %v592_v36 = vld [vmem:[%s591_s21] sm:$0xff]  ;;  %666 = vmatpush.msra.mxu2 %v593_v35  ;;  %s1509_s25 = scalar_lea.vmem (%p553_p1), [#allocation4], %s1298_s17  ;;  %s917_s1 = sshll.u32 (%p553_p1), %s1133_s9, 1 }
 0x361   : >> { %v674_v49 = vld [vmem:[%s673_s15] sm:$0xf]  ;;  %s715_s11 = sadd.s32 (%p553_p1), %s1129_s30, %s917_s1  ;;  %s1510_s24 = smov (%p553_p1), %s1509_s25 }
 0x362   : >> { %581 = vmatpush.msra.mxu0 %v561_v24  ;;  %910 = vmatpush.xpose.msk.msra.mxu1 %vm594_vm11, %v589_v25  ;;  %s719_s13 = sshll.u32 (%p553_p1), %s1510_s24, 4  ;;  %s918_s14 = sshll.u32 (%p553_p1), %s715_s11, 3  ;;  %s720_s13 = int_to_ptr.vmem [resolvable:$true] %s719_s13 }
 0x363   : >> { %667 = vmatpush.msra.mxu2 %v592_v36  ;;  %914 = vmatpush.msk.msra.mxu3 %vm678_vm1, %v674_v49  ;;  %s717_s26 = scalar_lea.hbm (%p553_p1), %s1492_s8, %s918_s14  ;;  %s1511_s22 = sand.u32 (%p553_p1), 1, %s1121_s28  }
 0x364   : >> { %582 = vmatpush.msra.mxu0 %v560_v26  ;;  %s721_s0 = sshll.u32 (%p553_p1), %s717_s26, 4  ;;  %s705_s16 = scalar_lea.sflag (%p553_p1), [#allocation5], %s1511_s22  ;;  %s722_s0 = int_to_ptr.hbm [resolvable:$true] %s721_s0 }
 0x365   : >> { %907 = vmatmul.msk.f32.vlgmr.msra.gmra.mxu0 %vm509_vm6, %v1398_v22  ;;  %s1053_s15 = sshra.s32 (%p553_p1), %s722_s0, 4  ;;  %s1059_s17 = scalar_lea.hbm (%p553_p1), %s1492_s8, 32  ;;  %s1054_s15 = int_to_ptr.hbm [resolvable:$true] %s1053_s15 }
 0x366   : > { %s1055_s2 = scalar_lea.hbm (%p553_p1), %s1054_s15, 8  ;;  %p1060_p6 = scmp.lt.s32.totalorder (%p553_p1), %s1054_s15, %s1492_s8 }
 0x367   : > { %p1056_p2 = scmp.ne.s32.totalorder (%p553_p1), %s1054_s15, %s1055_s2  ;;  %p1061_p7 = scmp.lt.s32.totalorder (%p553_p1), %s1059_s17, %s1055_s2 }
 0x369   : > { %p1057_p4 = pnand (%p553_p1), %p1056_p2, %p1264_p3  ;;  %p1062_p9 = por (%p553_p1), %p1061_p7, %p1060_p6 }
 0x36b   : > { %p1058_p5 = pneg (%p553_p1), %p1057_p4 }
 0x36d   : > { %p1063_p10 = pnand (%p553_p1), %p1062_p9, %p1058_p5 }
 0x3e2   : >> { %v584_v27 = vpop.f32.mrf.mxu0 }
 0x3e3   : >> { %911 = vmatmul.msk.f32.vlgmr.msra.gmra.mxu1 %vm594_vm11, %v584_v27 }
 0x460   : >> { %v621_v28 = vpop.f32.mrf.mxu1 }
 0x461   : >> { %v625_v29 = vsel %vm624_vm12, %v621_v28, -inf }
 0x462   : >> { %626 = vmax.xlane.f32.xlu0 %v625_v29 }
 0x4d5   : >> { %v627_v30 = vpop.xlane.xlu0 %626 }
 0x4d6   : >> { %v628_v31 = vsub.f32 %v621_v28, %v627_v30 }
 0x4d8   : >> { %v629_v32 = vmul.f32 1.442695, %v628_v31 }
 0x4da   : >> { %1035 = vpow2.f32 %v629_v32 }
 0x4e0   : >> { %v1036_v33 = vpop.eup %1035 }
 0x4e1   : >> { %v631_v34 = vsel %vm624_vm12, %v1036_v33, 0.0 }
 0x4e2   : >> { %632 = vadd.xlane.f32.xlu0 %v631_v34 }
 0x555   : >> { %v633_v37 = vpop.xlane.xlu0 %632 }
 0x556   : >> { %1037 = vrcp.f32 %v633_v37  ;;  %v645_v41 = vand.u32 2147483648, %v633_v37  ;;  %v643_v43 = vand.u32 2147483647, %v633_v37  ;;  %vm639_vm14 = vweird.f32 %v633_v37 }
 0x558   : >> { %v646_v45 = vor.u32 1.1754944e-38, %v645_v41  ;;  %vm644_vm0 = vcmp.eq.f32.partialorder %v643_v43, 8.507059e+37 }
 0x55c   : >> { %v1038_v38 = vpop.eup %1037 }
 0x55d   : >> { %v635_v39 = vmul.f32 %v1038_v38, %v633_v37  ;;  %vm640_vm13 = vweird.f32 %v1038_v38 }
 0x55e   : >> { %vm641_vm15 = vmor %vm639_vm14, %vm640_vm13 }
 0x55f   : >> { %v636_v40 = vsub.f32 1.0, %v635_v39 }
 0x561   : >> { %v637_v42 = vmul.f32 %v1038_v38, %v636_v40 }
 0x563   : >> { %v638_v44 = vadd.f32 %v1038_v38, %v637_v42 }
 0x565   : >> { %v642_v46 = vsel %vm641_vm15, %v1038_v38, %v638_v44 }
 0x566   : >> { %v647_v47 = vsel %vm644_vm0, %v646_v45, %v642_v46 }
 0x567   : >> { %v648_v48 = vmul.f32 %v1036_v33, %v647_v47 }
 0x569   : >> { %912 = vmatmul.msk.f32.vlgmr.msra.gmra.mxu2 %vm624_vm12, %v648_v48 }
 0x5ec   : >> { %v669_v50 = vpop.f32.mrf.mxu2 }
 0x5ed   : >> { %915 = vmatmul.msk.f32.vlgmr.msra.gmra.mxu3 %vm594_vm11, %v669_v50 }
 0x66f   : > { %555 = sbr.rel (!%p553_p1) target bundleno = 859 (0x35b), region = 138 }
 0x670   : >> { %v699_v51 = vpop.f32.mrf.mxu3 }
 0x671   : >> { %v702_v52 = vadd.f32 %v1153_v7, %v699_v51  }
 0x673   : >> { %v1508_v7 = vmov %v702_v52  ;;  %703 = vst.msk [vmem:[%s1509_s25] sm:$0xff] (%p553_p1), %vm509_vm6, %v702_v52 }
 0x674   : > { %1066 = shalt.err (!%p1063_p10)
}
 0x675   : > { %922 = dma.vmem_to_hbm [thread:$0]  (%p1264_p3), %s720_s13, 128, %s722_s0, %s705_s16  }
 0x676 PF: > { %p928_p11 = scmp.ge.s32.totalorder %s1145_s12, 2  ;;  %s733_s11 = sand.u32 1, %s1117_s27  }
 0x677   : > { %s734_s24 = scalar_lea.sflag [#allocation5], %s733_s11 }
 0x678   : > { %p925_p12 = pnand %p928_p11, %p1273_p8 }
 0x67a   : > { %p926_p13 = pneg %p925_p12 }
 0x67c   : > { %1112 = dma.done.wait (%p926_p13), %s734_s24, 128  }
 0x67d   : > { %1114 = vsyncadd (%p926_p13), %s734_s24, 4294967168  ;;  %s21_s12 = sadd.s32 1, %s1145_s12   ;;  %s1512_s9 = sld [smem:[#allocation7_spill]] }
 0x67e   : > { %p18_p0 = scmp.ge.s32.totalorder %s21_s12, 6   ;;  %s1513_s2 = sld [smem:[#allocation8_spill]] }
 0x67f   : > { %s1514_s11 = sld [smem:[#allocation9_spill]]  ;;  %s1515_s27 = smov %s1121_s28 }
 0x680   : > { %s1516_s28 = smov %s1125_s29  ;;  %s1517_s29 = smov %s1282_s23 }
 0x681   : > { %s1518_s30 = smov %s1137_s10  ;;  %20 = sbr.rel (!%p18_p0) target bundleno = 9 (0x9), region = 149 }
 0x684   : > { %s1519_s10 = smov %s1513_s2 }
 0x686   :  { %740 = vsyncpa [#allocation5], 1 }
 0x687   :  { %742 = vsyncpa [#allocation5 + $0x1], 1 }

</bundles_post_ra>
